<compile_context>
chip_gen: v5e
topology: v5e:2x2
jax: 0.10.0
libtpu: 0.0.40
codegen_flags: <defaults>
</compile_context>

<pallas_src>
import math

import jax
import jax.numpy as jnp
from jax.experimental import pallas as pl
from jax.experimental.pallas import tpu as pltpu


NUM_QUERIES = 8
N_OUT = 128          # lane-dense padded output width of the fused head
BBOX_COLS = 4        # output cols 0..3 = box coords
OBJ_COL = 4          # output col 4 = objectness logit


def _nbytes(*arrays):
    return int(sum(a.size * a.dtype.itemsize for a in arrays))


# ----------------------------------------------------------------------------
# ShapeAdapter:  y = relu( relu(x @ W1) @ W2 )        (both Linears bias-free)
# Row-tiled grid ("parallel"); weights use constant index maps -> DMA'd once.
# ----------------------------------------------------------------------------
def shape_adapter_kernel(x_ref, w1_ref, w2_ref, o_ref):
    h = jnp.dot(x_ref[...], w1_ref[...], preferred_element_type=jnp.float32)
    h = jnp.maximum(h, 0.0)
    y = jnp.dot(h, w2_ref[...], preferred_element_type=jnp.float32)
    y = jnp.maximum(y, 0.0)
    o_ref[...] = y.astype(o_ref.dtype)


def shape_adapter(x, w1, w2, *, tm=256):
    n, c = x.shape
    tm = min(tm, n)
    n_pad = pl.cdiv(n, tm) * tm
    xp = jnp.pad(x, ((0, n_pad - n), (0, 0))) if n_pad != n else x
    out = pl.pallas_call(
        shape_adapter_kernel,
        out_shape=jax.ShapeDtypeStruct((n_pad, c), x.dtype),
        grid=(n_pad // tm,),
        in_specs=[
            pl.BlockSpec((tm, c), lambda i: (i, 0)),
            pl.BlockSpec(w1.shape, lambda i: (0, 0)),
            pl.BlockSpec(w2.shape, lambda i: (0, 0)),
        ],
        out_specs=pl.BlockSpec((tm, c), lambda i: (i, 0)),
        compiler_params=pltpu.CompilerParams(dimension_semantics=("parallel",)),
    )(xp, w1, w2)
    return out[:n]


# ----------------------------------------------------------------------------
# input_proj: 1x1 Conv2d(C_in -> hidden), lane-dense.
# Batch folded into the lane axis: x viewed as (C_in, B*H*W) (padded to a
# multiple of 128), one W^T @ X matmul per lane tile -> every store is an
# unmasked 128-wide vst.  Grid over lane tiles, "parallel".
# ----------------------------------------------------------------------------
def conv1x1_kernel(x_ref, wt_ref, b_ref, o_ref):
    # x_ref: (C_in, TN)   wt_ref: (hidden, C_in)   b_ref: (hidden, 1)
    y = jnp.dot(wt_ref[...], x_ref[...], preferred_element_type=jnp.float32)
    o_ref[...] = (y + b_ref[...]).astype(o_ref.dtype)


def conv1x1_nchw(x_nchw, proj_wt, proj_bcol):
    B, C, H, W = x_nchw.shape
    hidden = proj_wt.shape[0]
    P = H * W
    N = B * P
    # Fold batch into lanes: (B, C, P) -> (C, B*P).  Tiny XLA transpose outside
    # the kernel; removes the 64-wide masked stores and the per-batch grid.
    x2 = jnp.transpose(x_nchw.reshape(B, C, P), (1, 0, 2)).reshape(C, N)
    TN = min(512, pl.cdiv(N, 128) * 128)          # lane-dense tile (>=128 wide)
    Np = pl.cdiv(N, TN) * TN
    if Np != N:
        x2 = jnp.pad(x2, ((0, 0), (0, Np - N)))
    cost = pl.CostEstimate(
        flops=2 * hidden * C * Np,
        transcendentals=0,
        bytes_accessed=_nbytes(x2, proj_wt, proj_bcol) + hidden * Np * x_nchw.dtype.itemsize,
    )
    y2 = pl.pallas_call(
        conv1x1_kernel,
        out_shape=jax.ShapeDtypeStruct((hidden, Np), x_nchw.dtype),
        grid=(Np // TN,),
        in_specs=[
            pl.BlockSpec((C, TN), lambda i: (0, i)),
            pl.BlockSpec((hidden, C), lambda i: (0, 0)),
            pl.BlockSpec((hidden, 1), lambda i: (0, 0)),
        ],
        out_specs=pl.BlockSpec((hidden, TN), lambda i: (0, i)),
        compiler_params=pltpu.CompilerParams(dimension_semantics=("parallel",)),
        cost_estimate=cost,
    )(x2, proj_wt, proj_bcol)
    # (hidden, B*P) -> (B, hidden, H, W)
    return jnp.transpose(y2[:, :N].reshape(hidden, B, P), (1, 0, 2)).reshape(B, hidden, H, W)


# ----------------------------------------------------------------------------
# Fused per-decoder-level heads (ONE pallas_call, grid = (L, M_tiles)):
#   layer 1 : x @ [bbox_w1_l | obj_w1]                       (merged, per-level)
#   layer 2 : h = relu(h @ bbox_w2_l + b) ; g = relu(g @ obj_w2 + b)   (separate)
#   layer 3 : [h | g] @ [[bbox_w3_pad_l];[obj_w3_pad]]       (merged, disjoint cols)
#   output  : cols 0..3 = sigmoid(inverse_sigmoid(reference) + offset)
#             col  4    = objectness logit      (lane-dense 128-wide store)
# The merge relies on obj_w3/obj_b3 being exactly zero outside column 4 and
# bbox_w3/bbox_b3 zero outside columns 0..3 (guaranteed by the packing below);
# preserve that invariant when loading trained checkpoints.
# ----------------------------------------------------------------------------
def fused_head_kernel(hs_ref, ref_ref,
                      w1_ref, b1_ref,          # (1, H, 2H), (1, 1, 2H)   per level
                      bw2_ref, bb2_ref,        # (1, H, H),  (1, 1, H)    per level
                      ow2_ref, ob2_ref,        # (H, H),     (1, H)       shared
                      w3_ref, b3_ref,          # (1, 2H, N_OUT), (1, 1, N_OUT) per level
                      o_ref):
    hdim = hs_ref.shape[-1]
    x = hs_ref[0].astype(jnp.float32)                                        # (tm, H)

    # layer 1 (merged bbox|obj): one (tm,H)@(H,2H) MXU push
    hg = jnp.dot(x, w1_ref[0], preferred_element_type=jnp.float32) + b1_ref[0]
    hg = jnp.maximum(hg, 0.0)                                                # (tm, 2H)

    # layer 2: branch-specific weights (bbox per-level, obj shared across levels)
    h = jnp.maximum(
        jnp.dot(hg[:, :hdim], bw2_ref[0], preferred_element_type=jnp.float32) + bb2_ref[0], 0.0)
    g = jnp.maximum(
        jnp.dot(hg[:, hdim:], ow2_ref[...], preferred_element_type=jnp.float32) + ob2_ref[...], 0.0)

    # layer 3 (merged): output columns of the two branches are disjoint, so one
    # (tm,2H)@(2H,N_OUT) matmul + one bias add produces both offsets and logit.
    out = (jnp.dot(jnp.concatenate([h, g], axis=1), w3_ref[0],
                   preferred_element_type=jnp.float32) + b3_ref[0])          # (tm, N_OUT)

    # inverse_sigmoid(reference), DETR eps convention.  Columns >= 4 of ref are
    # zero padding (inv ~ -11.5 there); they are masked by the select below and
    # never read — do not rely on their values in future refactors.
    eps = 1e-5
    r = jnp.clip(ref_ref[0].astype(jnp.float32), 0.0, 1.0)
    inv = jnp.log(jnp.maximum(r, eps)) - jnp.log(jnp.maximum(1.0 - r, eps))
    coords = jax.nn.sigmoid(inv + out)                                       # (tm, N_OUT)

    col = jax.lax.broadcasted_iota(jnp.int32, out.shape, 1)
    # col 4 (objectness) intentionally bypasses sigmoid(inv + .)
    o_ref[0] = jnp.where(col < BBOX_COLS, coords, out).astype(o_ref.dtype)


def fused_heads(hs3, ref_pad, p):
    L, M, H = hs3.shape
    tm = min(M, 128)                     # <=128 rows/step keeps intermediates out of spill territory
    Mp = pl.cdiv(M, tm) * tm
    if Mp != M:
        hs3 = jnp.pad(hs3, ((0, 0), (0, Mp - M), (0, 0)))
        ref_pad = jnp.pad(ref_pad, ((0, 0), (0, Mp - M), (0, 0)))

    def lvl(a):          # per-level operand: index on the L grid axis only
        return pl.BlockSpec((1,) + a.shape[1:], lambda l, m: (l, 0, 0))

    def shared(a):       # shared operand: constant index map -> DMA'd once
        return pl.BlockSpec(a.shape, lambda l, m: (0, 0))

    operands = (hs3, ref_pad,
                p["h1_w"], p["h1_b"],
                p["bbox_w2"], p["bbox_b2"],
                p["obj_w2"], p["obj_b2"],
                p["h3_w"], p["h3_b"])
    cost = pl.CostEstimate(
        flops=int(L * Mp * (8 * H * H + 4 * H * N_OUT)),
        transcendentals=int(L * Mp * N_OUT * 3),
        bytes_accessed=_nbytes(*operands) + int(L * Mp * N_OUT * 4),
    )
    out = pl.pallas_call(
        fused_head_kernel,
        out_shape=jax.ShapeDtypeStruct((L, Mp, N_OUT), jnp.float32),
        grid=(L, Mp // tm),
        in_specs=[
            pl.BlockSpec((1, tm, H), lambda l, m: (l, m, 0)),
            pl.BlockSpec((1, tm, N_OUT), lambda l, m: (l, m, 0)),
            lvl(p["h1_w"]), lvl(p["h1_b"]),
            lvl(p["bbox_w2"]), lvl(p["bbox_b2"]),
            shared(p["obj_w2"]), shared(p["obj_b2"]),
            lvl(p["h3_w"]), lvl(p["h3_b"]),
        ],
        out_specs=pl.BlockSpec((1, tm, N_OUT), lambda l, m: (l, m, 0)),
        compiler_params=pltpu.CompilerParams(
            dimension_semantics=("parallel", "parallel")),
        cost_estimate=cost,
    )(*operands)
    return out[:, :M]


# ----------------------------------------------------------------------------
# parameter construction (deterministic, mirrors __init__ shapes / init rules)
# ----------------------------------------------------------------------------
def _linear_w(key, fan_in, fan_out, scale=0.02):
    return scale * jax.random.normal(key, (fan_in, fan_out), jnp.float32)


def make_params(key, *, c_adapter, c_backbone, hidden_dim, dec_layers, prior_prob):
    H, L = hidden_dim, dec_layers
    keys = iter(jax.random.split(key, 16 + 6 * L))
    nk = lambda: next(keys)
    p = {}

    # ShapeAdapter(c_adapter, reduction=4): two bias-free Linears
    p["sa_w1"] = _linear_w(nk(), c_adapter, c_adapter // 4)
    p["sa_w2"] = _linear_w(nk(), c_adapter // 4, c_adapter)

    # input_proj: Conv2d(c_backbone, hidden_dim, kernel_size=1) with bias.
    # Stored pre-transposed / pre-reshaped so the forward emits no layout ops.
    proj_w = _linear_w(nk(), c_backbone, H)
    proj_b = 0.01 * jax.random.normal(nk(), (H,), jnp.float32)
    p["proj_wt"] = jnp.transpose(proj_w)            # (H, C_backbone)
    p["proj_b"] = proj_b.reshape(H, 1)              # column bias

    # objectness = MLP(hidden, hidden, 1, 3); last bias = -log((1-p)/p); shared over levels.
    bias_value = -math.log((1.0 - prior_prob) / prior_prob)
    ow1 = _linear_w(nk(), H, H); ob1 = 0.01 * jax.random.normal(nk(), (1, H), jnp.float32)
    ow2 = _linear_w(nk(), H, H); ob2 = 0.01 * jax.random.normal(nk(), (1, H), jnp.float32)
    ow3 = _linear_w(nk(), H, 1); ob3 = jnp.full((1, 1), bias_value, jnp.float32)

    # bbox_embed = MLP(hidden, hidden, 4, 3), cloned per decoder level (_get_clones).
    # Distinct values per level so per-level BlockSpec indexing is exercised.
    # NOTE: the PyTorch module zero-inits the LAST bbox layer; small non-zero
    # values are used here so the merged last-layer matmul is actually covered
    # by the correctness check — the kernel is weight-value agnostic, so the
    # zero init (or a trained checkpoint) drops in unchanged.
    bw1, bb1, bw2, bb2, bw3, bb3 = [], [], [], [], [], []
    for _ in range(L):
        bw1.append(_linear_w(nk(), H, H))
        bb1.append(0.01 * jax.random.normal(nk(), (1, H), jnp.float32))
        bw2.append(_linear_w(nk(), H, H))
        bb2.append(0.01 * jax.random.normal(nk(), (1, H), jnp.float32))
        bw3.append(_linear_w(nk(), H, BBOX_COLS, scale=0.05))
        bb3.append(0.01 * jax.random.normal(nk(), (1, BBOX_COLS), jnp.float32))

    # raw (unpacked) weights — consumed only by the pure-JAX reference
    p["raw_obj"] = (ow1, ob1, ow2, ob2, ow3, ob3)
    p["raw_bbox"] = (jnp.stack(bw1), jnp.stack(bb1), jnp.stack(bw2), jnp.stack(bb2),
                     jnp.stack(bw3), jnp.stack(bb3))

    # ---- packed weights for the fused kernel ----
    # layer 1 merged: x @ [bbox_w1_l | obj_w1]
    p["h1_w"] = jnp.stack([jnp.concatenate([bw1[l], ow1], axis=1) for l in range(L)])  # (L, H, 2H)
    p["h1_b"] = jnp.stack([jnp.concatenate([bb1[l], ob1], axis=1) for l in range(L)])  # (L, 1, 2H)
    # layer 2: bbox per level, obj shared
    p["bbox_w2"] = jnp.stack(bw2)                                                       # (L, H, H)
    p["bbox_b2"] = jnp.stack(bb2)                                                       # (L, 1, H)
    p["obj_w2"] = ow2                                                                   # (H, H)
    p["obj_b2"] = ob2                                                                   # (1, H)
    # layer 3 merged: [h | g] @ [[bbox_w3 zero-padded to cols 0..3]; [obj_w3 at col 4]]
    # -> disjoint output columns, zero-padded to N_OUT=128 for lane-dense stores.
    ow3_pad = jnp.pad(ow3, ((0, 0), (OBJ_COL, N_OUT - OBJ_COL - 1)))                    # (H, N_OUT)
    ob3_pad = jnp.pad(ob3, ((0, 0), (OBJ_COL, N_OUT - OBJ_COL - 1)))                    # (1, N_OUT)
    p["h3_w"] = jnp.stack([
        jnp.concatenate([jnp.pad(bw3[l], ((0, 0), (0, N_OUT - BBOX_COLS))), ow3_pad], axis=0)
        for l in range(L)])                                                             # (L, 2H, N_OUT)
    p["h3_b"] = jnp.stack([
        jnp.pad(bb3[l], ((0, 0), (0, N_OUT - BBOX_COLS))) + ob3_pad for l in range(L)]) # (L, 1, N_OUT)

    # query_embed = nn.Embedding(num_queries, 4)  (consumed by the external transformer)
    p["query_embed"] = jax.random.normal(nk(), (NUM_QUERIES, 4), jnp.float32)
    return p


# ----------------------------------------------------------------------------
# FastDETR forward (Pallas-backed for the module's own compute)
# ----------------------------------------------------------------------------
def fast_detr_forward(params, src, hs, reference, text_feature, tau=100):
    """
    src:          [B, C_backbone, H, W]   backbone feature (stubbed, NCHW)
    hs:           [L, B, Q, hidden]       decoder states (stubbed transformer output)
    reference:    [L, B, Q, 4]            reference boxes in (0,1) (stubbed)
    text_feature: [num_classes, D_text]   classifier output (stubbed)
    """
    outputs = dict(text_feature=text_feature, tau=tau)

    # input_proj[0](src): 1x1 conv, lane-dense Pallas channel matmul
    proj = conv1x1_nchw(src, params["proj_wt"], params["proj_b"])
    outputs["features"] = proj                          # stands in for `srcs[0]`

    L, B, Q, H = hs.shape
    M = B * Q
    hs3 = hs.reshape(L, M, H)
    ref_pad = jnp.pad(reference.reshape(L, M, BBOX_COLS),
                      ((0, 0), (0, 0), (0, N_OUT - BBOX_COLS)))

    fused = fused_heads(hs3, ref_pad, params)           # (L, M, N_OUT)
    outputs_coords = fused[..., :BBOX_COLS].reshape(L, B, Q, BBOX_COLS)
    objectness = fused[..., OBJ_COL:OBJ_COL + 1].reshape(L, B, Q, 1)

    outputs["pred_logits"] = objectness[-1]
    outputs["pred_boxes"] = outputs_coords[-1]
    outputs["aux_outputs"] = [
        {"pred_logits": objectness[l], "pred_boxes": outputs_coords[l]} for l in range(L - 1)
    ]
    return outputs, outputs_coords, objectness


# ----------------------------------------------------------------------------
# pure-JAX reference (for correctness checks only)
# ----------------------------------------------------------------------------
def ref_forward(params, src, hs, reference):
    B, C, Hh, Ww = src.shape
    x2 = jnp.transpose(src, (0, 2, 3, 1)).reshape(-1, C)
    proj = (x2 @ params["proj_wt"].T + params["proj_b"].reshape(-1)).reshape(B, Hh, Ww, -1)
    proj = jnp.transpose(proj, (0, 3, 1, 2))

    ow1, ob1, ow2, ob2, ow3, ob3 = params["raw_obj"]
    bw1, bb1, bw2, bb2, bw3, bb3 = params["raw_bbox"]
    L, _, Q, H = hs.shape
    hs2 = hs.reshape(L, B * Q, H)
    ref2 = reference.reshape(L, B * Q, BBOX_COLS)
    eps = 1e-5
    coords, objs = [], []
    for l in range(L):
        h = jax.nn.relu(hs2[l] @ bw1[l] + bb1[l])
        h = jax.nn.relu(h @ bw2[l] + bb2[l])
        off = h @ bw3[l] + bb3[l]
        r = jnp.clip(ref2[l], 0.0, 1.0)
        inv = jnp.log(jnp.maximum(r, eps) / jnp.maximum(1.0 - r, eps))
        coords.append(jax.nn.sigmoid(inv + off))
        g = jax.nn.relu(hs2[l] @ ow1 + ob1)
        g = jax.nn.relu(g @ ow2 + ob2)
        objs.append(g @ ow3 + ob3)
    return (proj,
            jnp.stack(coords).reshape(L, B, Q, BBOX_COLS),
            jnp.stack(objs).reshape(L, B, Q, 1))


if __name__ == "__main__":
    key = jax.random.PRNGKey(0)

    # small shapes consistent with the forward pass
    B, C_BACK, Himg, Wimg = 2, 64, 8, 8       # backbone feature map (NCHW)
    HIDDEN = 32                               # args.hidden_dim
    L = 2                                     # args.dec_layers
    Q = NUM_QUERIES                           # args.num_queries
    C_ADAPTER = 1024                          # clip_RN50 ShapeAdapter width
    NUM_CLASSES, D_TEXT = 6, 32
    PRIOR_PROB = 0.01

    params = make_params(
        jax.random.PRNGKey(42),
        c_adapter=C_ADAPTER, c_backbone=C_BACK, hidden_dim=HIDDEN,
        dec_layers=L, prior_prob=PRIOR_PROB,
    )

    k1, k2, k3, k4, k5 = jax.random.split(key, 5)
    src = jax.random.normal(k1, (B, C_BACK, Himg, Wimg), jnp.float32)
    hs = jax.random.normal(k2, (L, B, Q, HIDDEN), jnp.float32)
    reference = jax.random.uniform(k3, (L, B, Q, 4), jnp.float32, 0.05, 0.95)
    text_feature = jax.random.normal(k4, (NUM_CLASSES, D_TEXT), jnp.float32)

    outputs, coords_all, obj_all = fast_detr_forward(params, src, hs, reference, text_feature)

    # ShapeAdapter is defined in __init__ (never called inside FastDETR.forward
    # itself — the backbone consumes it); exercise its kernel separately.
    x_sa = jax.random.normal(k5, (8, C_ADAPTER), jnp.float32)
    sa_out = shape_adapter(x_sa, params["sa_w1"], params["sa_w2"])

    jax.block_until_ready(outputs["pred_logits"])
    jax.block_until_ready(outputs["pred_boxes"])
    jax.block_until_ready(outputs["features"])
    jax.block_until_ready(sa_out)

    # correctness against pure-JAX reference
    proj_ref, coords_ref, obj_ref = ref_forward(params, src, hs, reference)
    assert jnp.allclose(proj_ref, outputs["features"], atol=1e-4)
    assert jnp.allclose(coords_ref, coords_all, atol=1e-4)
    assert jnp.allclose(obj_ref, obj_all, atol=1e-4)
    assert jnp.allclose(obj_ref[-1], outputs["pred_logits"], atol=1e-4)
    assert outputs["pred_boxes"].shape == (B, Q, 4)
    assert outputs["features"].shape == (B, HIDDEN, Himg, Wimg)

    sa_ref = jax.nn.relu(jax.nn.relu(x_sa @ params["sa_w1"]) @ params["sa_w2"])
    assert jnp.allclose(sa_ref, sa_out, atol=1e-4)
    assert sa_out.shape == (8, C_ADAPTER)

    print("KERNEL_OK")
</pallas_src>

<mosaic_0001>
module attributes {stable_mosaic.version = 11 : i64} {
  func.func @conv1x1_kernel(%arg0: i32, %arg1: memref<64x128xf32, #tpu.memory_space<vmem>>, %arg2: memref<32x64xf32, #tpu.memory_space<vmem>>, %arg3: memref<32x1xf32, #tpu.memory_space<vmem>>, %arg4: memref<32x128xf32, #tpu.memory_space<vmem>>) attributes {dimension_semantics = [#tpu.dimension_semantics<parallel>], iteration_bounds = array<i64: 1>, scalar_prefetch = 0 : i64, scratch_operands = 0 : i64, tpu.core_type = #tpu.core_type<tc>, window_params = [{transform_indices = @transform_0, window_bounds = array<i64: 64, 128>}, {pipeline_mode = #tpu.pipeline_mode<synchronous>, transform_indices = @transform_1, window_bounds = array<i64: 32, 64>}, {pipeline_mode = #tpu.pipeline_mode<synchronous>, transform_indices = @transform_2, window_bounds = array<i64: 32, 1>}, {transform_indices = @transform_3, window_bounds = array<i64: 32, 128>}]} {
    %c0 = arith.constant 0 : index
    %c0_0 = arith.constant 0 : index
    %0 = vector.load %arg2[%c0, %c0_0] : memref<32x64xf32, #tpu.memory_space<vmem>>, vector<32x64xf32>
    %c0_1 = arith.constant 0 : index
    %c0_2 = arith.constant 0 : index
    %1 = vector.load %arg1[%c0_1, %c0_2] : memref<64x128xf32, #tpu.memory_space<vmem>>, vector<64x128xf32>
    %cst = arith.constant dense<0.000000e+00> : vector<32x128xf32>
    %2 = tpu.matmul %0, %1, %cst {dimension_numbers = #tpu.dot_dimension_numbers<[1], [0], [0], [1], [0, 0, 1, 1], [], []>} : vector<32x64xf32>, vector<64x128xf32>, vector<32x128xf32> -> vector<32x128xf32>
    %c0_3 = arith.constant 0 : index
    %c0_4 = arith.constant 0 : index
    %3 = vector.load %arg3[%c0_3, %c0_4] : memref<32x1xf32, #tpu.memory_space<vmem>>, vector<32x1xf32>
    %4 = vector.broadcast %3 : vector<32x1xf32> to vector<32x128xf32>
    %5 = arith.addf %2, %4 : vector<32x128xf32>
    %c0_5 = arith.constant 0 : index
    %c0_6 = arith.constant 0 : index
    %6 = vector.load %arg4[%c0_5, %c0_6] : memref<32x128xf32, #tpu.memory_space<vmem>>, vector<32x128xf32>
    tpu.vector_store %arg4[%c0_5, %c0_6], %5 {strides = array<i32>} : memref<32x128xf32, #tpu.memory_space<vmem>>, vector<32x128xf32>,
    return
  }
  func.func @transform_0(%arg0: i32) -> (i32, i32) {
    %c0_i32 = arith.constant 0 : i32
    %c0_i32_0 = arith.constant 0 : i32
    return %c0_i32, %arg0 : i32, i32
  }
  func.func @transform_1(%arg0: i32) -> (i32, i32) {
    %c0_i32 = arith.constant 0 : i32
    %c0_i32_0 = arith.constant 0 : i32
    %c0_i32_1 = arith.constant 0 : i32
    return %c0_i32, %c0_i32_0 : i32, i32
  }
  func.func @transform_2(%arg0: i32) -> (i32, i32) {
    %c0_i32 = arith.constant 0 : i32
    %c0_i32_0 = arith.constant 0 : i32
    %c0_i32_1 = arith.constant 0 : i32
    return %c0_i32, %c0_i32_0 : i32, i32
  }
  func.func @transform_3(%arg0: i32) -> (i32, i32) {
    %c0_i32 = arith.constant 0 : i32
    %c0_i32_0 = arith.constant 0 : i32
    return %c0_i32, %arg0 : i32, i32
  }
}

</mosaic_0001>

<bundles_post_ra>
// kernel: tpu_custom_call.1
= control target key start
LH: loop header
LB: loop body
LE: loop exit
PB: predicated region body
PF: predicated region fallthrough
CT: control target
= control target key end

     0   :  { %8 = vsyncpa [#allocation3], 0  ;;  %s280_s0 = inlined_call_operand.hbm [shape: f32[64,128], index: 0, kind: input, shape index: {}]   ;;  %s281_s1 = inlined_call_operand.vmem [shape: f32[32,64], index: 1, kind: input, shape index: {}]   ;;  %s282_s2 = inlined_call_operand.vmem [shape: f32[32,1], index: 2, kind: input, shape index: {}]   ;;  %s283_s3 = inlined_call_operand.hbm [shape: f32[32,128], index: 3, kind: output, shape index: {}]  }
   0x1   :  { %9 = vsyncpa [#allocation4], 0  ;;  %s14_s14 = sshll.u32 %s280_s0, 4  ;;  %s219_s15 = smov [#allocation2]   ;;  %s15_s14 = int_to_ptr.hbm [resolvable:$true] %s14_s14 }
   0x2   :  { %s16_s16 = sshll.u32 %s219_s15, 4  ;;  %s220_s17 = smov 128   ;;  %s17_s16 = int_to_ptr.vmem [resolvable:$true] %s16_s16 }
   0x3   :  { %s221_s18 = smov 8  }
   0x4   :  { %22 = dma.hbm_to_vmem [thread:$0]  %s15_s14, 1024, %s17_s16, [#allocation3], %s220_s17, %s220_s17, %s221_s18  }
   0x5   :  { %215 = dma.done.wait [#allocation3], 1024  }
   0x6   :  { %216 = vsyncadd [#allocation3], 4294966272  ;;  %v222_v0 = vmov 0   ;;  %v42_v1 = vld [vmem:[#allocation2 + $0x38] sm:$0xff]  ;;  %v41_v2 = vld [vmem:[#allocation2 + $0x30] sm:$0xff]  ;;  %vm67_vm0 = vcmask 523264  }
   0x7   :  { %166 = vset.pattern.permute.xlu1 %v222_v0  ;;  %165 = vset.pattern.permute.xlu0 %v222_v0  ;;  %v40_v3 = vld [vmem:[#allocation2 + $0x28] sm:$0xff]  ;;  %v39_v4 = vld [vmem:[#allocation2 + $0x20] sm:$0xff]  ;;  %v38_v5 = vld [vmem:[#allocation2 + $0x18] sm:$0xff]  ;;  %s223_s6 = smov [#allocation5]   ;;  %s119_s10 = sshll.u32 %s283_s3, 4  ;;  %s120_s10 = int_to_ptr.hbm [resolvable:$true] %s119_s10 }
   0x8   :  { %88 = vmatpush.msra.mxu0 %v42_v1  ;;  %136 = vmatpush.msra.mxu1 %v42_v1  ;;  %v37_v6 = vld [vmem:[#allocation2 + $0x10] sm:$0xff]  ;;  %v36_v7 = vld [vmem:[#allocation2 + $0x8] sm:$0xff]  ;;  %v35_v8 = vld [vmem:[#allocation2] sm:$0xff]  ;;  %s117_s7 = sshll.u32 %s223_s6, 4  ;;  %s118_s7 = int_to_ptr.vmem [resolvable:$true] %s117_s7 }
   0x9   :  { %137 = vmatpush.msra.mxu2 %v42_v1  ;;  %138 = vmatpush.msra.mxu3 %v42_v1  ;;  %v31_v9 = vld [vmem:[%s281_s1] sm:$0xff]  ;;  %v32_v10 = vld [vmem:[%s281_s1 + $0x8] sm:$0xff]  ;;  %v33_v11 = vld [vmem:[%s281_s1 + $0x10] sm:$0xff] }
   0xa   :  { %89 = vmatpush.msra.mxu0 %v41_v2  ;;  %139 = vmatpush.msra.mxu1 %v41_v2  ;;  %v34_v12 = vld [vmem:[%s281_s1 + $0x18] sm:$0xff]  ;;  %v45_v13 = vld [vmem:[%s282_s2 + $0x10] sm:$0xff]  ;;  %v43_v14 = vld [vmem:[%s282_s2] sm:$0xff] }
   0xb   :  { %140 = vmatpush.msra.mxu2 %v41_v2  ;;  %141 = vmatpush.msra.mxu3 %v41_v2  ;;  %v46_v15 = vld [vmem:[%s282_s2 + $0x18] sm:$0xff]  ;;  %v44_v16 = vld [vmem:[%s282_s2 + $0x8] sm:$0xff] }
   0xc   :  { %90 = vmatpush.msra.mxu0 %v40_v3  ;;  %142 = vmatpush.msra.mxu1 %v40_v3 }
   0xd   :  { %143 = vmatpush.msra.mxu2 %v40_v3  ;;  %144 = vmatpush.msra.mxu3 %v40_v3 }
   0xe   :  { %91 = vmatpush.msra.mxu0 %v39_v4  ;;  %145 = vmatpush.msra.mxu1 %v39_v4 }
   0xf   :  { %146 = vmatpush.msra.mxu2 %v39_v4  ;;  %147 = vmatpush.msra.mxu3 %v39_v4 }
  0x10   :  { %92 = vmatpush.msra.mxu0 %v38_v5  ;;  %148 = vmatpush.msra.mxu1 %v38_v5 }
  0x11   :  { %149 = vmatpush.msra.mxu2 %v38_v5  ;;  %150 = vmatpush.msra.mxu3 %v38_v5 }
  0x12   :  { %93 = vmatpush.msra.mxu0 %v37_v6  ;;  %151 = vmatpush.msra.mxu1 %v37_v6 }
  0x13   :  { %152 = vmatpush.msra.mxu2 %v37_v6  ;;  %153 = vmatpush.msra.mxu3 %v37_v6 }
  0x14   :  { %94 = vmatpush.msra.mxu0 %v36_v7  ;;  %154 = vmatpush.msra.mxu1 %v36_v7 }
  0x15   :  { %155 = vmatpush.msra.mxu2 %v36_v7  ;;  %156 = vmatpush.msra.mxu3 %v36_v7 }
  0x16   :  { %95 = vmatpush.msra.mxu0 %v35_v8  ;;  %157 = vmatpush.msra.mxu1 %v35_v8 }
  0x17   :  { %158 = vmatpush.msra.mxu2 %v35_v8  ;;  %159 = vmatpush.msra.mxu3 %v35_v8 }
  0x18   :  { %132 = vmatmul.msk.f32.vlgmr.msra.gmra.mxu0 %vm67_vm0, %v31_v9  ;;  %133 = vmatmul.msk.f32.vlgmr.msra.gmra.mxu1 %vm67_vm0, %v32_v10 }
  0x19   :  { %134 = vmatmul.msk.f32.vlgmr.msra.gmra.mxu2 %vm67_vm0, %v33_v11  ;;  %135 = vmatmul.msk.f32.vlgmr.msra.gmra.mxu3 %vm67_vm0, %v34_v12 }
  0x1a   :  { %59 = vperm.xlu1 %166, %v45_v13   ;;  %49 = vperm.xlu0 %165, %v43_v14  }
  0x22   :  { %64 = vperm.xlu1 %166, %v46_v15   ;;  %54 = vperm.xlu0 %165, %v44_v16  }
  0x8c   :  { %v50_v17 = vpop.permute.xlu0 %49  ;;  %v60_v18 = vpop.permute.xlu1 %59 }
  0x94   :  { %v55_v19 = vpop.permute.xlu0 %54  ;;  %v65_v24 = vpop.permute.xlu1 %64 }
  0x95   :  { %v97_v20 = vpop.f32.mrf.mxu0  ;;  %v100_v21 = vpop.f32.mrf.mxu1 }
  0x96   :  { %v98_v22 = vadd.f32 %v97_v20, %v50_v17  ;;  %v101_v23 = vadd.f32 %v100_v21, %v55_v19 }
  0x98   :  { %109 = vst [vmem:[#allocation5] sm:$0xff] %v98_v22 }
  0x99   :  { %110 = vst [vmem:[#allocation5 + $0x8] sm:$0xff] %v101_v23 }
  0x9c   :  { %v103_v25 = vpop.f32.mrf.mxu2  ;;  %v106_v26 = vpop.f32.mrf.mxu3 }
  0x9d   :  { %v104_v27 = vadd.f32 %v103_v25, %v60_v18  ;;  %v107_v28 = vadd.f32 %v106_v26, %v65_v24 }
  0x9f   :  { %111 = vst [vmem:[#allocation5 + $0x10] sm:$0xff] %v104_v27 }
  0xa0   :  { %112 = vst [vmem:[#allocation5 + $0x18] sm:$0xff] %v107_v28 }
  0xa1   :  { %125 = dma.vmem_to_hbm [thread:$0]  %s118_s7, 512, %s120_s10, [#allocation4], %s220_s17, %s220_s17, %s221_s18  }
  0xa2   :  { %217 = dma.done.wait [#allocation4], 512  }
  0xa3   :  { %218 = vsyncadd [#allocation4], 4294966784 }
  0xa4   :  { %130 = vsyncpa [#allocation3], 1 }
  0xa5   :  { %131 = vsyncpa [#allocation4], 1 }

</bundles_post_ra>
